<compile_context>
chip_gen: v6e
topology: v6e:2x2x1
jax: 0.10.0
libtpu: 0.0.40
codegen_flags: <defaults>
</compile_context>

<pallas_src>
import jax
import jax.numpy as jnp
from jax import lax
from jax.experimental import pallas as pl
from jax.experimental.pallas import tpu as pltpu

_MIB = 1024 * 1024


def _round_up(x, m):
    return ((x + m - 1) // m) * m


def _sublane_granule(dtype):
    # 8 rows/vreg for 4-byte dtypes, 16 for 2-byte, 32 for 1-byte.
    return max(8, 32 // jnp.dtype(dtype).itemsize)


def _vmem_capacity_bytes():
    try:
        info = pltpu.get_tpu_info()
        cap = getattr(info, "vmem_capacity_bytes", None)
        if cap:
            return int(cap)
    except Exception:
        pass
    return 64 * _MIB  # conservative fallback (v7x per-TC VMEM)


def _largest_divisor_tile(dim, granule, cap, fits=None):
    """Largest t <= cap that is a multiple of `granule`, divides `dim`, and
    satisfies fits(t).  Returns None if no candidate works."""
    t = min(dim, max(granule, (cap // granule) * granule))
    while t >= granule:
        if dim % t == 0 and (fits is None or fits(t)):
            return t
        t -= granule
    return None


def _vmem_limit(phys, footprint):
    lim = max(32 * _MIB, footprint + 8 * _MIB)
    return int(min(lim, int(phys * 0.75)))


# Contract last dim of x tile (tm, tk) with last dim of W tile (tn, tk):
# exactly x @ W.T, no transpose materialized (MXU handles NT natively).
_DOT_DIMS = (((1,), (1,)), ((), ()))


def _fc_single_k_kernel(x_ref, w_ref, o_ref):
    """Whole reduction in one tile: write the result directly."""
    o_ref[...] = lax.dot_general(
        x_ref[...], w_ref[...],
        dimension_numbers=_DOT_DIMS,
        preferred_element_type=jnp.float32,
    ).astype(o_ref.dtype)


def _fc_multi_k_kernel_f32out(x_ref, w_ref, o_ref):
    """Multi K tiles, f32 output: accumulate directly into the resident
    output block (no scratch, no final copy)."""
    @pl.when(pl.program_id(2) == 0)
    def _():
        o_ref[...] = jnp.zeros_like(o_ref)

    o_ref[...] += lax.dot_general(
        x_ref[...], w_ref[...],
        dimension_numbers=_DOT_DIMS,
        preferred_element_type=jnp.float32,
    )


def _fc_multi_k_kernel(x_ref, w_ref, o_ref, acc_ref):
    """Multi K tiles, non-f32 output: accumulate in f32 VMEM scratch."""
    @pl.when(pl.program_id(2) == 0)
    def _():
        acc_ref[...] = jnp.zeros_like(acc_ref)

    acc_ref[...] += lax.dot_general(
        x_ref[...], w_ref[...],
        dimension_numbers=_DOT_DIMS,
        preferred_element_type=jnp.float32,
    )

    @pl.when(pl.program_id(2) == pl.num_programs(2) - 1)
    def _():
        o_ref[...] = acc_ref[...].astype(o_ref.dtype)


def full_layer_forward(x, weight, *, tm=None, tn=None, tk=None):
    """Pallas implementation of Full_layer.forward.

    x:      (B, feature_num)
    weight: (class_num, feature_num)   -- PyTorch nn.Linear weight layout
    returns (B, class_num) in x's original dtype.

    Compute dtype follows weight.dtype: for the bf16 MXU path, store/cast
    the weight to bf16 ONCE outside the hot path and pass it here; x (the
    small operand) is cast to match in this wrapper.
    """
    B, F = x.shape
    C, F2 = weight.shape
    assert F == F2, "feature dim mismatch"

    out_dtype = x.dtype
    if x.dtype != weight.dtype:
        # x is the small operand; cast it rather than touching W in HBM.
        x = x.astype(weight.dtype)

    x_bytes = jnp.dtype(x.dtype).itemsize
    w_bytes = jnp.dtype(weight.dtype).itemsize
    o_bytes = jnp.dtype(out_dtype).itemsize

    # Pad only to the layout granule (sublane/lane), never to tile size.
    m_granule = _sublane_granule(x.dtype)
    B_p = _round_up(B, m_granule)
    C_p = _round_up(C, 128)
    F_p = _round_up(F, 128)

    if (B_p, F_p) != (B, F):
        x = jnp.pad(x, ((0, B_p - B), (0, F_p - F)))
    if (C_p, F_p) != (C, F):
        # Only hit when C or F is not 128-aligned (one extra HBM pass over
        # W); for aligned shapes W goes to the kernel untouched.
        weight = jnp.pad(weight, ((0, C_p - C), (0, F_p - F)))

    phys_vmem = _vmem_capacity_bytes()
    budget = int(phys_vmem * 0.45)  # double-buffered working-set target

    flops = 2 * B_p * C_p * F_p
    bytes_accessed = (C_p * F_p * w_bytes + B_p * F_p * x_bytes
                      + B_p * C_p * o_bytes)
    cost = pl.CostEstimate(flops=flops, transcendentals=0,
                           bytes_accessed=bytes_accessed)

    # ---------------- single-K (preferred) path selection ----------------
    use_single_k = not (tk is not None and tk < F_p)
    tm_s = tm
    tn_s = tn

    if use_single_k:
        if tm_s is None:
            tm_s = _largest_divisor_tile(
                B_p, m_granule, 512,
                lambda t: 2 * t * F_p * x_bytes <= int(budget * 0.4))
        if tm_s is None:
            use_single_k = False
        else:
            gi = B_p // tm_s
            x_foot = 2 * tm_s * F_p * x_bytes

            def tn_fits(t):
                return (x_foot + 2 * t * F_p * w_bytes
                        + 2 * tm_s * t * o_bytes) <= budget

            tn_cap = 1024
            # v7x megacore: keep >=2 tiles on a parallel axis when the batch
            # axis has already collapsed to a single tile.
            if gi == 1 and C_p >= 256:
                tn_cap = min(tn_cap, C_p // 2)
            if tn_s is None:
                tn_s = _largest_divisor_tile(C_p, 128, tn_cap, tn_fits)
            if tn_s is None:
                use_single_k = False

    if use_single_k:
        gi = B_p // tm_s
        gj = C_p // tn_s
        footprint = (2 * tm_s * F_p * x_bytes + 2 * tn_s * F_p * w_bytes
                     + 2 * tm_s * tn_s * o_bytes)
        vmem_limit = _vmem_limit(phys_vmem, footprint)

        # Grid order = loop nest with the least HBM traffic.
        #   x-outer (class axis innermost): x streamed once, W streamed gi x.
        #   w-outer (batch axis innermost): W streamed once, x streamed gj x.
        x_total = B_p * F_p * x_bytes
        w_total = C_p * F_p * w_bytes
        if gi * w_total + x_total <= gj * x_total + w_total:
            grid = (gi, gj)
            x_map = lambda i, j: (i, 0)
            w_map = lambda i, j: (j, 0)
            o_map = lambda i, j: (i, j)
        else:
            grid = (gj, gi)
            x_map = lambda j, i: (i, 0)
            w_map = lambda j, i: (j, 0)
            o_map = lambda j, i: (i, j)

        out = pl.pallas_call(
            _fc_single_k_kernel,
            out_shape=jax.ShapeDtypeStruct((B_p, C_p), out_dtype),
            grid_spec=pltpu.PrefetchScalarGridSpec(
                num_scalar_prefetch=0,
                grid=grid,
                in_specs=[
                    pl.BlockSpec((tm_s, F_p), x_map),
                    pl.BlockSpec((tn_s, F_p), w_map),
                ],
                out_specs=pl.BlockSpec((tm_s, tn_s), o_map),
            ),
            compiler_params=pltpu.CompilerParams(
                dimension_semantics=("parallel", "parallel"),
                vmem_limit_bytes=vmem_limit),
            cost_estimate=cost,
        )(x, weight)
    else:
        # ---------------- multi-K fallback (very large F) ----------------
        # TODO(synk): for B_p//tm > 1 this still re-streams W per batch tile;
        # only reached when a (tm, F_p) x tile does not fit the VMEM budget.
        tm_m = tm if tm is not None else (
            _largest_divisor_tile(B_p, m_granule, 256) or m_granule)
        tn_m = tn if tn is not None else (
            _largest_divisor_tile(C_p, 128, 512) or 128)
        if tk is None:
            def tk_fits(t):
                return (2 * tm_m * t * x_bytes + 2 * tn_m * t * w_bytes
                        + 2 * tm_m * tn_m * o_bytes) <= budget
            tk_m = _largest_divisor_tile(F_p, 128, 2048, tk_fits) or 128
        else:
            tk_m = tk
        assert B_p % tm_m == 0 and C_p % tn_m == 0
        assert F_p % tk_m == 0 and tk_m % 128 == 0

        footprint = (2 * tm_m * tk_m * x_bytes + 2 * tn_m * tk_m * w_bytes
                     + 2 * tm_m * tn_m * o_bytes + tm_m * tn_m * 4)
        vmem_limit = _vmem_limit(phys_vmem, footprint)

        acc_in_out = jnp.dtype(out_dtype) == jnp.dtype(jnp.float32)
        kernel = _fc_multi_k_kernel_f32out if acc_in_out else _fc_multi_k_kernel
        scratch = [] if acc_in_out else [pltpu.VMEM((tm_m, tn_m), jnp.float32)]

        out = pl.pallas_call(
            kernel,
            out_shape=jax.ShapeDtypeStruct((B_p, C_p), out_dtype),
            grid_spec=pltpu.PrefetchScalarGridSpec(
                num_scalar_prefetch=0,
                grid=(B_p // tm_m, C_p // tn_m, F_p // tk_m),
                in_specs=[
                    pl.BlockSpec((tm_m, tk_m), lambda i, j, k: (i, k)),
                    pl.BlockSpec((tn_m, tk_m), lambda i, j, k: (j, k)),
                ],
                out_specs=pl.BlockSpec((tm_m, tn_m), lambda i, j, k: (i, j)),
                scratch_shapes=scratch,
            ),
            compiler_params=pltpu.CompilerParams(
                dimension_semantics=("parallel", "parallel", "arbitrary"),
                vmem_limit_bytes=vmem_limit),
            cost_estimate=cost,
        )(x, weight)

    if (B_p, C_p) != (B, C):
        out = out[:B, :C]
    return out


if __name__ == "__main__":
    key = jax.random.PRNGKey(0)
    kx, kw, kx2, kw2, kx3, kw3 = jax.random.split(key, 6)

    # --- Test 1: module-sized shapes, f32 (single-K fast path). ---
    feature_num, class_num, batch = 32, 16, 8
    x = jax.random.normal(kx, (batch, feature_num), dtype=jnp.float32)
    bound = 1.0 / (feature_num ** 0.5)
    weight = jax.random.uniform(
        kw, (class_num, feature_num), minval=-bound, maxval=bound,
        dtype=jnp.float32)

    out = jax.block_until_ready(full_layer_forward(x, weight))
    ref = x @ weight.T
    assert out.shape == (batch, class_num)
    assert jnp.allclose(out, ref, atol=1e-5, rtol=1e-5), "f32 mismatch"

    # --- Test 2: explicit tk forces the multi-K accumulator path. ---
    feature_num2 = 256
    x2 = jax.random.normal(kx2, (batch, feature_num2), dtype=jnp.float32)
    bound2 = 1.0 / (feature_num2 ** 0.5)
    weight2 = jax.random.uniform(
        kw2, (class_num, feature_num2), minval=-bound2, maxval=bound2,
        dtype=jnp.float32)
    out2 = jax.block_until_ready(full_layer_forward(x2, weight2, tk=128))
    ref2 = x2 @ weight2.T
    assert jnp.allclose(out2, ref2, atol=1e-5, rtol=1e-5), "multi-K mismatch"

    # --- Test 3: bf16 MXU path — weight pre-cast ONCE outside the wrapper. ---
    weight_bf16 = weight.astype(jnp.bfloat16)
    out_bf16 = jax.block_until_ready(full_layer_forward(x, weight_bf16))
    assert out_bf16.dtype == jnp.float32
    assert jnp.allclose(out_bf16, ref, atol=5e-2, rtol=5e-2), "bf16 mismatch"

    # --- Test 4: 128-aligned multi-tile shapes (no host-side W pad). ---
    B4, C4, F4 = 64, 384, 512
    x4 = jax.random.normal(kx3, (B4, F4), dtype=jnp.float32)
    bound4 = 1.0 / (F4 ** 0.5)
    weight4 = jax.random.uniform(
        kw3, (C4, F4), minval=-bound4, maxval=bound4, dtype=jnp.float32)
    out4 = jax.block_until_ready(full_layer_forward(x4, weight4))
    ref4 = jnp.matmul(x4, weight4.T, precision=lax.Precision.HIGHEST)
    assert out4.shape == (B4, C4)
    assert jnp.allclose(out4, ref4, atol=1e-4, rtol=1e-4), "aligned mismatch"

    print("KERNEL_OK")
</pallas_src>

<mosaic_0001>
module attributes {stable_mosaic.version = 11 : i64} {
  func.func @_fc_single_k_kernel(%arg0: i32, %arg1: i32, %arg2: memref<8x128xf32, #tpu.memory_space<vmem>>, %arg3: memref<128x128xf32, #tpu.memory_space<vmem>>, %arg4: memref<8x128xf32, #tpu.memory_space<vmem>>) attributes {dimension_semantics = [#tpu.dimension_semantics<parallel>, #tpu.dimension_semantics<parallel>], iteration_bounds = array<i64: 1, 1>, scalar_prefetch = 0 : i64, scratch_operands = 0 : i64, tpu.core_type = #tpu.core_type<tc>, window_params = [{transform_indices = @transform_0, window_bounds = array<i64: 8, 128>}, {transform_indices = @transform_1, window_bounds = array<i64: 128, 128>}, {transform_indices = @transform_2, window_bounds = array<i64: 8, 128>}]} {
    %c0 = arith.constant 0 : index
    %c0_0 = arith.constant 0 : index
    %0 = vector.load %arg2[%c0, %c0_0] : memref<8x128xf32, #tpu.memory_space<vmem>>, vector<8x128xf32>
    %c0_1 = arith.constant 0 : index
    %c0_2 = arith.constant 0 : index
    %1 = vector.load %arg3[%c0_1, %c0_2] : memref<128x128xf32, #tpu.memory_space<vmem>>, vector<128x128xf32>
    %cst = arith.constant dense<0.000000e+00> : vector<8x128xf32>
    %2 = tpu.matmul %0, %1, %cst {dimension_numbers = #tpu.dot_dimension_numbers<[1], [1], [0], [0], [0, 0, 1, 0], [], []>} : vector<8x128xf32>, vector<128x128xf32>, vector<8x128xf32> -> vector<8x128xf32>
    %c0_3 = arith.constant 0 : index
    %c0_4 = arith.constant 0 : index
    %3 = vector.load %arg4[%c0_3, %c0_4] : memref<8x128xf32, #tpu.memory_space<vmem>>, vector<8x128xf32>
    tpu.vector_store %arg4[%c0_3, %c0_4], %2 {strides = array<i32>} : memref<8x128xf32, #tpu.memory_space<vmem>>, vector<8x128xf32>,
    return
  }
  func.func @transform_0(%arg0: i32, %arg1: i32) -> (i32, i32) {
    %c0_i32 = arith.constant 0 : i32
    %c0_i32_0 = arith.constant 0 : i32
    return %arg0, %c0_i32 : i32, i32
  }
  func.func @transform_1(%arg0: i32, %arg1: i32) -> (i32, i32) {
    %c0_i32 = arith.constant 0 : i32
    %c0_i32_0 = arith.constant 0 : i32
    return %arg1, %c0_i32 : i32, i32
  }
  func.func @transform_2(%arg0: i32, %arg1: i32) -> (i32, i32) {
    %c0_i32 = arith.constant 0 : i32
    return %arg0, %arg1 : i32, i32
  }
}

</mosaic_0001>

<bundles_post_ra>
// kernel: tpu_custom_call.1
= control target key start
LH: loop header
LB: loop body
LE: loop exit
PB: predicated region body
PF: predicated region fallthrough
CT: control target
= control target key end

     0   :  { %7 = vsyncpa [#allocation3], 0  ;;  %s298_s0 = inlined_call_operand.hbm [shape: f32[8,128], index: 0, kind: input, shape index: {}]   ;;  %s299_s1 = inlined_call_operand.hbm [shape: f32[128,128], index: 1, kind: input, shape index: {}]   ;;  %s300_s2 = inlined_call_operand.hbm [shape: f32[8,128], index: 2, kind: output, shape index: {}]  }
   0x1   :  { %8 = vsyncpa [#allocation6], 0 }
   0x2   :  { %9 = vsyncpa [#allocation4], 0  ;;  %s267_s9 = smov [#allocation2]   ;;  %s268_s11 = smov [#allocation5]  }
   0x3   :  { %s16_s10 = sshll.u32 %s267_s9, 4  ;;  %s25_s12 = sshll.u32 %s268_s11, 4  ;;  %s17_s10 = int_to_ptr.vmem [resolvable:$true] %s16_s10  ;;  %s26_s12 = int_to_ptr.vmem [resolvable:$true] %s25_s12 }
   0x4   :  { %s209_s13 = scalar_lea.vmem %s17_s10, 128  ;;  %p214_p1 = scmp.lt.s32.totalorder %s17_s10, %s17_s10 }
   0x5   :  { %p210_p0 = scmp.ne.s32.totalorder %s17_s10, %s209_s13  ;;  %p215_p2 = scmp.lt.s32.totalorder %s209_s13, %s209_s13 }
   0x7   :  { %p216_p3 = por %p215_p2, %p214_p1 }
   0x9   :  { %p217_p4 = pnand %p216_p3, %p210_p0 }
   0xb   :  { %220 = shalt.err (!%p217_p4)
}
   0xc   :  { %19 = dma.hbm_to_vmem [thread:$0]  %s298_s0, 128, %s17_s10, [#allocation3]  }
   0xd   :  { %s229_s16 = scalar_lea.vmem %s26_s12, 2048  ;;  %p234_p6 = scmp.lt.s32.totalorder %s26_s12, %s26_s12 }
   0xe   :  { %p230_p5 = scmp.ne.s32.totalorder %s26_s12, %s229_s16  ;;  %p235_p7 = scmp.lt.s32.totalorder %s229_s16, %s229_s16 }
  0x10   :  { %p236_p8 = por %p235_p7, %p234_p6 }
  0x12   :  { %p237_p9 = pnand %p236_p8, %p230_p5 }
  0x14   :  { %240 = shalt.err (!%p237_p9)
}
  0x15   :  { %s269_s17 = smov 128   ;;  %s270_s18 = smov 8  }
  0x16   :  { %31 = dma.hbm_to_vmem [thread:$0]  %s299_s1, 2048, %s26_s12, [#allocation6], %s269_s17, %s269_s17, %s270_s18  }
  0x17   :  { %261 = dma.done.wait [#allocation3], 128  }
  0x18   :  { %262 = vsyncadd [#allocation3], 4294967168 }
  0x19   :  { %263 = dma.done.wait [#allocation6], 2048  }
  0x1a   :  { %264 = vsyncadd [#allocation6], 4294965248  ;;  %v271_v0 = vmov 0.0   ;;  %vm272_vm0 = vmmov 0   ;;  %v54_v1 = vld [vmem:[#allocation5 + $0x78] sm:$0xff]  ;;  %v53_v2 = vld [vmem:[#allocation5 + $0x70] sm:$0xff] }
  0x1b   :  { %159 = vmatprep.subr.mxu0 %v271_v0  ;;  %191 = vmatprep.mubr.msk.f32.mxu0 %vm272_vm0, %v271_v0  ;;  %v52_v3 = vld [vmem:[#allocation5 + $0x68] sm:$0xff]  ;;  %v51_v4 = vld [vmem:[#allocation5 + $0x60] sm:$0xff]  ;;  %v50_v5 = vld [vmem:[#allocation5 + $0x58] sm:$0xff]  ;;  %s273_s0 = smov [#allocation7]  }
  0x1c   :  { %160 = vmatpush3.xpose.msra.mxu0 %v54_v1  ;;  %v49_v6 = vld [vmem:[#allocation5 + $0x50] sm:$0xff]  ;;  %v48_v7 = vld [vmem:[#allocation5 + $0x48] sm:$0xff]  ;;  %v47_v8 = vld [vmem:[#allocation5 + $0x40] sm:$0xff]  ;;  %s132_s1 = sshll.u32 %s273_s0, 4  ;;  %s133_s1 = int_to_ptr.vmem [resolvable:$true] %s132_s1 }
  0x1d   :  { %161 = vmatprep.subr.mxu0 %v271_v0  ;;  %v46_v9 = vld [vmem:[#allocation5 + $0x38] sm:$0xff]  ;;  %v45_v10 = vld [vmem:[#allocation5 + $0x30] sm:$0xff]  ;;  %v44_v11 = vld [vmem:[#allocation5 + $0x28] sm:$0xff]  ;;  %s241_s21 = scalar_lea.vmem %s133_s1, 128  ;;  %p246_p11 = scmp.lt.s32.totalorder %s133_s1, %s133_s1 }
  0x1e   :  { %v43_v12 = vld [vmem:[#allocation5 + $0x20] sm:$0xff]  ;;  %v42_v13 = vld [vmem:[#allocation5 + $0x18] sm:$0xff]  ;;  %v41_v14 = vld [vmem:[#allocation5 + $0x10] sm:$0xff]  ;;  %p242_p10 = scmp.ne.s32.totalorder %s133_s1, %s241_s21  ;;  %p247_p12 = scmp.lt.s32.totalorder %s241_s21, %s241_s21 }
  0x1f   :  { %v40_v15 = vld [vmem:[#allocation5 + $0x8] sm:$0xff]  ;;  %v39_v16 = vld [vmem:[#allocation5] sm:$0xff]  ;;  %v38_v17 = vld [vmem:[#allocation2] sm:$0xff] }
  0x20   :  { %162 = vmatpush3.xpose.msra.mxu0 %v53_v2  ;;  %p248_p13 = por %p247_p12, %p246_p11 }
  0x21   :  { %163 = vmatprep.subr.mxu0 %v271_v0 }
  0x22   :  { %p249_p0 = pnand %p248_p13, %p242_p10 }
  0x24   :  { %164 = vmatpush3.xpose.msra.mxu0 %v52_v3 }
  0x25   :  { %165 = vmatprep.subr.mxu0 %v271_v0 }
  0x28   :  { %166 = vmatpush3.xpose.msra.mxu0 %v51_v4 }
  0x29   :  { %167 = vmatprep.subr.mxu0 %v271_v0 }
  0x2c   :  { %168 = vmatpush3.xpose.msra.mxu0 %v50_v5 }
  0x2d   :  { %169 = vmatprep.subr.mxu0 %v271_v0 }
  0x30   :  { %170 = vmatpush3.xpose.msra.mxu0 %v49_v6 }
  0x31   :  { %171 = vmatprep.subr.mxu0 %v271_v0 }
  0x34   :  { %172 = vmatpush3.xpose.msra.mxu0 %v48_v7 }
  0x35   :  { %173 = vmatprep.subr.mxu0 %v271_v0 }
  0x38   :  { %174 = vmatpush3.xpose.msra.mxu0 %v47_v8 }
  0x39   :  { %175 = vmatprep.subr.mxu0 %v271_v0 }
  0x3c   :  { %176 = vmatpush3.xpose.msra.mxu0 %v46_v9 }
  0x3d   :  { %177 = vmatprep.subr.mxu0 %v271_v0 }
  0x40   :  { %178 = vmatpush3.xpose.msra.mxu0 %v45_v10 }
  0x41   :  { %179 = vmatprep.subr.mxu0 %v271_v0 }
  0x44   :  { %180 = vmatpush3.xpose.msra.mxu0 %v44_v11 }
  0x45   :  { %181 = vmatprep.subr.mxu0 %v271_v0 }
  0x48   :  { %182 = vmatpush3.xpose.msra.mxu0 %v43_v12 }
  0x49   :  { %183 = vmatprep.subr.mxu0 %v271_v0 }
  0x4c   :  { %184 = vmatpush3.xpose.msra.mxu0 %v42_v13 }
  0x4d   :  { %185 = vmatprep.subr.mxu0 %v271_v0 }
  0x50   :  { %186 = vmatpush3.xpose.msra.mxu0 %v41_v14 }
  0x51   :  { %187 = vmatprep.subr.mxu0 %v271_v0 }
  0x54   :  { %188 = vmatpush3.xpose.msra.mxu0 %v40_v15 }
  0x55   :  { %189 = vmatprep.subr.mxu0 %v271_v0 }
  0x58   :  { %190 = vmatpush3.xpose.msra.mxu0 %v39_v16 }
  0x5b   :  { %192 = vmatmul.mubr.f32.vlgmr.msra.gmra.mxu0 %v38_v17 }
 0x11b   :  { %v121_v18 = vpop.f32.mrf.mxu0 }
 0x11c   :  { %125 = vst [vmem:[#allocation7] sm:$0xff] %v121_v18 }
 0x11d   :  { %v193_v19 = vpop.f32.mrf.mxu0 }
 0x11e   :  { %252 = shalt.err (!%p249_p0)
}
 0x11f   :  { %135 = dma.vmem_to_hbm [thread:$0]  %s133_s1, 128, %s300_s2, [#allocation4]  }
 0x120   :  { %265 = dma.done.wait [#allocation4], 128  }
 0x121   :  { %266 = vsyncadd [#allocation4], 4294967168 }
 0x122   :  { %139 = vsyncpa [#allocation3], 1 }
 0x123   :  { %140 = vsyncpa [#allocation6], 1 }
 0x124   :  { %141 = vsyncpa [#allocation4], 1 }

</bundles_post_ra>
